<compile_context>
chip_gen: v7x
topology: tpu7x:2x2x1
jax: 0.10.0
libtpu: 0.0.40
codegen_flags: <defaults>
</compile_context>

<pallas_src>
import jax
import jax.numpy as jnp
from jax.experimental import pallas as pl
from jax.experimental.pallas import tpu as pltpu


def _fast_sigmoid(x):
    """1 / (1 + exp(-x)); exp + approx reciprocal both go to the EUP slot."""
    return pl.reciprocal(1.0 + jnp.exp(-x), approx=True)


def ann_kernel(xt_ref, w1t_ref, b1_ref, w2_ref, b2_ref, out_ref):
    """One batch tile, batch on the lane axis.

    xt_ref : (D, TB) f32   input tile (batch on lanes), pipelined per grid step
    w1t_ref: (H, D)  bf16  layer1 weight^T, grid-invariant (resident in VMEM)
    b1_ref : (H, 1)  f32   layer1 bias (broadcast over lanes)
    w2_ref : (H, 1)  f32   layer2 weight column (VPU multiplier)
    b2_ref : (1, 1)  f32   layer2 bias, SMEM scalar
    out_ref: (1, TB) f32   lane-dense output tile
    """
    # layer1 on the MXU in bf16, f32 accumulate: (H, D) @ (D, TB) -> (H, TB)
    xt = xt_ref[...].astype(jnp.bfloat16)
    h = jnp.dot(w1t_ref[...], xt, preferred_element_type=jnp.float32)
    h = _fast_sigmoid(h + b1_ref[...])                      # (H, TB)

    # layer2: output width 1 -> skip the MXU, VPU multiply + sublane reduction over H.
    y = jnp.sum(h * w2_ref[...], axis=0, keepdims=True)     # (1, TB)
    y = y + b2_ref[0, 0]
    out_ref[...] = _fast_sigmoid(y).astype(out_ref.dtype)


def _round_up(x, m):
    return ((x + m - 1) // m) * m


def ann_forward(x, w1, b1, w2, b2, *, tb=2048):
    """x: (B, D) f32, w1: (D, H), b1: (H,), w2: (H, 1), b2: (1,). Returns (B, 1) f32."""
    B, D = x.shape
    H = w1.shape[1]

    # Tile the batch on the lane axis; pad to a multiple of the tile size.
    tb_eff = min(tb, _round_up(B, 128))
    Bp = _round_up(B, tb_eff)

    xt = x.T                                   # (D, B) — layout plumbing in the wrapper
    if Bp != B:
        xt = jnp.pad(xt, ((0, 0), (0, Bp - B)))

    w1t = w1.T.astype(jnp.bfloat16)            # (H, D), cast once (MXU operand)
    b1_2d = b1.reshape(H, 1).astype(jnp.float32)
    w2_2d = w2.reshape(H, 1).astype(jnp.float32)
    b2_2d = b2.reshape(1, 1).astype(jnp.float32)

    out = pl.pallas_call(
        ann_kernel,
        out_shape=jax.ShapeDtypeStruct((1, Bp), jnp.float32),
        grid=(Bp // tb_eff,),
        in_specs=[
            pl.BlockSpec((D, tb_eff), lambda i: (0, i)),         # x tile, pipelined
            pl.BlockSpec((H, D), lambda i: (0, 0)),              # resident weight (bf16)
            pl.BlockSpec((H, 1), lambda i: (0, 0)),              # resident bias
            pl.BlockSpec((H, 1), lambda i: (0, 0)),              # resident weight col
            pl.BlockSpec(memory_space=pltpu.MemorySpace.SMEM),   # scalar bias b2
        ],
        out_specs=pl.BlockSpec((1, tb_eff), lambda i: (0, i)),   # lane-dense output
        compiler_params=pltpu.CompilerParams(
            dimension_semantics=("parallel",),   # shard batch tiles across TCs (v7x)
        ),
    )(xt, w1t, b1_2d, w2_2d, b2_2d)

    return out[:, :B].reshape(B, 1)


def reference_forward(x, w1, b1, w2, b2):
    h = jax.nn.sigmoid(x @ w1 + b1)
    return jax.nn.sigmoid(h @ w2 + b2)


if __name__ == "__main__":
    key = jax.random.PRNGKey(0)
    k_x, k_w1, k_b1, k_w2, k_b2 = jax.random.split(key, 5)

    batch = 256        # small demo shape; still exercises a full lane-dense tile
    input_dim = 16     # stands in for the CSV feature count
    hidden_dim = 32

    x = jax.random.normal(k_x, (batch, input_dim), dtype=jnp.float32)

    # Deterministic PyTorch-style Linear init: U(-1/sqrt(fan_in), 1/sqrt(fan_in))
    lim1 = 1.0 / jnp.sqrt(jnp.float32(input_dim))
    lim2 = 1.0 / jnp.sqrt(jnp.float32(hidden_dim))
    w1 = jax.random.uniform(k_w1, (input_dim, hidden_dim), jnp.float32, -lim1, lim1)
    b1 = jax.random.uniform(k_b1, (hidden_dim,), jnp.float32, -lim1, lim1)
    w2 = jax.random.uniform(k_w2, (hidden_dim, 1), jnp.float32, -lim2, lim2)
    b2 = jax.random.uniform(k_b2, (1,), jnp.float32, -lim2, lim2)

    out = ann_forward(x, w1, b1, w2, b2)
    jax.block_until_ready(out)

    ref = reference_forward(x, w1, b1, w2, b2)
    assert out.shape == (batch, 1)
    # layer1 runs in bf16 on the MXU + approx EUP reciprocal -> loosened tolerance
    assert jnp.allclose(out, ref, atol=2e-2, rtol=0.0), float(jnp.max(jnp.abs(out - ref)))

    # Also exercise the lane-padding path with a tiny, non-128-multiple batch.
    out_small = ann_forward(x[:8], w1, b1, w2, b2)
    jax.block_until_ready(out_small)
    assert out_small.shape == (8, 1)
    assert jnp.allclose(out_small, ref[:8], atol=2e-2, rtol=0.0)

    print("KERNEL_OK")
</pallas_src>

<mosaic_0001>
module attributes {stable_mosaic.version = 11 : i64} {
  func.func @ann_kernel(%arg0: i32, %arg1: memref<16x256xf32, #tpu.memory_space<vmem>>, %arg2: memref<32x16xbf16, #tpu.memory_space<vmem>>, %arg3: memref<32x1xf32, #tpu.memory_space<vmem>>, %arg4: memref<32x1xf32, #tpu.memory_space<vmem>>, %arg5: memref<1x1xf32, #tpu.memory_space<smem>>, %arg6: memref<1x256xf32, #tpu.memory_space<vmem>>) attributes {dimension_semantics = [#tpu.dimension_semantics<parallel>], iteration_bounds = array<i64: 1>, scalar_prefetch = 0 : i64, scratch_operands = 0 : i64, tpu.core_type = #tpu.core_type<tc>, window_params = [{transform_indices = @transform_0, window_bounds = array<i64: 16, 256>}, {pipeline_mode = #tpu.pipeline_mode<synchronous>, transform_indices = @transform_1, window_bounds = array<i64: 32, 16>}, {pipeline_mode = #tpu.pipeline_mode<synchronous>, transform_indices = @transform_2, window_bounds = array<i64: 32, 1>}, {pipeline_mode = #tpu.pipeline_mode<synchronous>, transform_indices = @transform_3, window_bounds = array<i64: 32, 1>}, {transform_indices = @transform_4, window_bounds = array<i64: 1, 1>}, {transform_indices = @transform_5, window_bounds = array<i64: 1, 256>}]} {
    %c0 = arith.constant 0 : index
    %c0_0 = arith.constant 0 : index
    %0 = vector.load %arg1[%c0, %c0_0] : memref<16x256xf32, #tpu.memory_space<vmem>>, vector<16x256xf32>
    %1 = arith.truncf %0 : vector<16x256xf32> to vector<16x256xbf16>
    %c0_1 = arith.constant 0 : index
    %c0_2 = arith.constant 0 : index
    %2 = vector.load %arg2[%c0_1, %c0_2] : memref<32x16xbf16, #tpu.memory_space<vmem>>, vector<32x16xbf16>
    %cst = arith.constant dense<0.000000e+00> : vector<32x256xf32>
    %3 = tpu.matmul %2, %1, %cst {dimension_numbers = #tpu.dot_dimension_numbers<[1], [0], [0], [1], [0, 0, 1, 1], [], []>} : vector<32x16xbf16>, vector<16x256xbf16>, vector<32x256xf32> -> vector<32x256xf32>
    %c0_3 = arith.constant 0 : index
    %c0_4 = arith.constant 0 : index
    %4 = vector.load %arg3[%c0_3, %c0_4] : memref<32x1xf32, #tpu.memory_space<vmem>>, vector<32x1xf32>
    %5 = vector.broadcast %4 : vector<32x1xf32> to vector<32x256xf32>
    %6 = arith.addf %3, %5 : vector<32x256xf32>
    %cst_5 = arith.constant 0.000000e+00 : f32
    %7 = vector.broadcast %cst_5 : f32 to vector<32x256xf32>
    %8 = arith.subf %7, %6 : vector<32x256xf32>
    %9 = math.exp %8 : vector<32x256xf32>
    %cst_6 = arith.constant 1.000000e+00 : f32
    %10 = vector.broadcast %cst_6 : f32 to vector<32x256xf32>
    %11 = arith.addf %10, %9 : vector<32x256xf32>
    %12 = tpu.reciprocal %11 {approx = true} : vector<32x256xf32> -> vector<32x256xf32>
    %c0_7 = arith.constant 0 : index
    %c0_8 = arith.constant 0 : index
    %13 = vector.load %arg4[%c0_7, %c0_8] : memref<32x1xf32, #tpu.memory_space<vmem>>, vector<32x1xf32>
    %14 = vector.broadcast %13 : vector<32x1xf32> to vector<32x256xf32>
    %15 = arith.mulf %12, %14 : vector<32x256xf32>
    %cst_9 = arith.constant dense<0.000000e+00> : vector<256xf32>
    %16 = vector.multi_reduction <add>, %15, %cst_9 [0] : vector<32x256xf32> to vector<256xf32>
    %17 = vector.shape_cast %16 : vector<256xf32> to vector<1x256xf32>
    %c0_10 = arith.constant 0 : index
    %c0_11 = arith.constant 0 : index
    %18 = memref.load %arg5[%c0_10, %c0_11] : memref<1x1xf32, #tpu.memory_space<smem>>
    %19 = vector.broadcast %18 : f32 to vector<1x256xf32>
    %20 = arith.addf %17, %19 : vector<1x256xf32>
    %cst_12 = arith.constant 0.000000e+00 : f32
    %21 = vector.broadcast %cst_12 : f32 to vector<1x256xf32>
    %22 = arith.subf %21, %20 : vector<1x256xf32>
    %23 = math.exp %22 : vector<1x256xf32>
    %cst_13 = arith.constant 1.000000e+00 : f32
    %24 = vector.broadcast %cst_13 : f32 to vector<1x256xf32>
    %25 = arith.addf %24, %23 : vector<1x256xf32>
    %26 = tpu.reciprocal %25 {approx = true} : vector<1x256xf32> -> vector<1x256xf32>
    %c0_14 = arith.constant 0 : index
    %c0_15 = arith.constant 0 : index
    %27 = vector.load %arg6[%c0_14, %c0_15] : memref<1x256xf32, #tpu.memory_space<vmem>>, vector<1x256xf32>
    tpu.vector_store %arg6[%c0_14, %c0_15], %26 {strides = array<i32>} : memref<1x256xf32, #tpu.memory_space<vmem>>, vector<1x256xf32>,
    return
  }
  func.func @transform_0(%arg0: i32) -> (i32, i32) {
    %c0_i32 = arith.constant 0 : i32
    %c0_i32_0 = arith.constant 0 : i32
    return %c0_i32, %arg0 : i32, i32
  }
  func.func @transform_1(%arg0: i32) -> (i32, i32) {
    %c0_i32 = arith.constant 0 : i32
    %c0_i32_0 = arith.constant 0 : i32
    %c0_i32_1 = arith.constant 0 : i32
    return %c0_i32, %c0_i32_0 : i32, i32
  }
  func.func @transform_2(%arg0: i32) -> (i32, i32) {
    %c0_i32 = arith.constant 0 : i32
    %c0_i32_0 = arith.constant 0 : i32
    %c0_i32_1 = arith.constant 0 : i32
    return %c0_i32, %c0_i32_0 : i32, i32
  }
  func.func @transform_3(%arg0: i32) -> (i32, i32) {
    %c0_i32 = arith.constant 0 : i32
    %c0_i32_0 = arith.constant 0 : i32
    %c0_i32_1 = arith.constant 0 : i32
    return %c0_i32, %c0_i32_0 : i32, i32
  }
  func.func @transform_4(%arg0: i32) -> (i32, i32) {
    %c0_i32 = arith.constant 0 : i32
    %c0_i32_0 = arith.constant 0 : i32
    %c0_i32_1 = arith.constant 0 : i32
    return %c0_i32, %c0_i32_0 : i32, i32
  }
  func.func @transform_5(%arg0: i32) -> (i32, i32) {
    %c0_i32 = arith.constant 0 : i32
    %c0_i32_0 = arith.constant 0 : i32
    return %c0_i32, %arg0 : i32, i32
  }
}

</mosaic_0001>

<bundles_post_ra>
// kernel: tpu_custom_call.1
= control target key start
LH: loop header
LB: loop body
LE: loop exit
PB: predicated region body
PF: predicated region fallthrough
CT: control target
= control target key end

     0   :  { %v345_v5 = vmov 0   ;;  %vm67_vm0 = vcmask 130048   ;;  %s435_s0 = inlined_call_operand.vmem [shape: f32[16,256], index: 0, kind: input, shape index: {}]   ;;  %s436_s1 = inlined_call_operand.vmem [shape: bf16[32,16], index: 1, kind: input, shape index: {}]   ;;  %s437_s2 = inlined_call_operand.vmem [shape: f32[32,1], index: 2, kind: input, shape index: {}]   ;;  %s438_s3 = inlined_call_operand.vmem [shape: f32[32,1], index: 3, kind: input, shape index: {}]   ;;  %s439_s4 = inlined_call_operand.<no memory space> [shape: f32[1,1], index: 4, kind: input, shape index: {}]   ;;  %s440_s5 = inlined_call_operand.hbm [shape: f32[1,256], index: 5, kind: output, shape index: {}]  }
   0x1   :  { %v24_v0 = vld [vmem:[%s435_s0 + $0x8] sm:$0xff]  ;;  %v26_v1 = vld [vmem:[%s435_s0 + $0x18] sm:$0xff]  ;;  %v23_v2 = vld [vmem:[%s435_s0] sm:$0xff]  ;;  %106 = vmatprep.mubr.bf16.mxu0 %v345_v5  ;;  %116 = vmatprep.mubr.bf16.mxu1 %v345_v5 }
   0x2   :  { %v28_v3 = vpack.c.bf16 %v26_v1, %v24_v0  ;;  %v25_v4 = vld [vmem:[%s435_s0 + $0x10] sm:$0xff]  ;;  %v279_v7 = vld [vmem:[%s436_s1] sm:$0xff]   ;;  %277 = vset.pattern.permute.xlu0 %v345_v5  ;;  %278 = vset.pattern.permute.xlu1 %v345_v5  ;;  %v280_v8 = vld [vmem:[%s436_s1 + $0x8] sm:$0xff]  }
   0x3   :  { %v27_v6 = vpack.c.bf16 %v25_v4, %v23_v2  ;;  %v33_v9 = vld [vmem:[%s437_s2] sm:$0xff]  ;;  %v35_v10 = vld [vmem:[%s437_s2 + $0x10] sm:$0xff]  ;;  %v34_v11 = vld [vmem:[%s437_s2 + $0x8] sm:$0xff] }
   0x4   :  { %74 = vmatprep.subr.bf16.mxu0 %v28_v3  ;;  %272 = vmatprep.subr.bf16.mxu1 %v28_v3  ;;  %v36_v12 = vld [vmem:[%s437_s2 + $0x18] sm:$0xff] }
   0x5   :  { %75 = vmatpush1.bf16.msra.mxu0 %v27_v6  ;;  %273 = vmatpush1.bf16.msra.mxu1 %v27_v6 }
   0x6   :  { %39 = vperm.xlu0 %277, %v33_v9   ;;  %49 = vperm.xlu1 %278, %v35_v10  }
   0x7   :  { %11 = vsyncpa [#allocation4], 0  ;;  %v167_v13 = vld [vmem:[%s438_s3] sm:$0xff]  ;;  %v168_v14 = vld [vmem:[%s438_s3 + $0x8] sm:$0xff] }
   0x8   :  { %270 = vmatmul.mubr.msk.bf16.vlgmr.msra.gmra.mrb[0].mxu0 %vm67_vm0, %v279_v7  ;;  %271 = vmatmul.mubr.msk.bf16.vlgmr.msra.gmra.mrb[0].mxu1 %vm67_vm0, %v280_v8  ;;  %v169_v15 = vld [vmem:[%s438_s3 + $0x10] sm:$0xff]  ;;  %v170_v16 = vld [vmem:[%s438_s3 + $0x18] sm:$0xff] }
   0xa   :  { %44 = vperm.xlu0 %277, %v34_v11   ;;  %54 = vperm.xlu1 %278, %v36_v12  }
   0xe   :  { %173 = vperm.xlu0 %277, %v167_v13   ;;  %178 = vperm.xlu1 %278, %v168_v14  }
  0x12   :  { %183 = vperm.xlu0 %277, %v169_v15   ;;  %188 = vperm.xlu1 %278, %v170_v16  }
  0x85   :  { %v40_v17 = vpop.permute.xlu0 %39  ;;  %v50_v18 = vpop.permute.xlu1 %49 }
  0x89   :  { %v45_v19 = vpop.permute.xlu0 %44  ;;  %v55_v20 = vpop.permute.xlu1 %54 }
  0x8d   :  { %v174_v6 = vpop.permute.xlu0 %173  ;;  %v179_v9 = vpop.permute.xlu1 %178 }
  0x91   :  { %v184_v16 = vpop.permute.xlu0 %183 }
  0xdb   :  { %v108_v21 = vpop.f32.mrb[0].mxu0  ;;  %v118_v22 = vpop.f32.mrb[0].mxu1 }
  0xdc   :  { %v109_v23 = vadd.f32 %v108_v21, %v40_v17  ;;  %v119_v24 = vadd.f32 %v118_v22, %v50_v18  ;;  %v110_v25 = vpop.f32.mrb[1].mxu0  ;;  %v120_v26 = vpop.f32.mrb[1].mxu1 }
  0xdd   :  { %v111_v27 = vadd.f32 %v110_v25, %v40_v17  ;;  %v121_v28 = vadd.f32 %v120_v26, %v50_v18  ;;  %v112_v29 = vpop.f32.mrb[2].mxu0  ;;  %v122_v30 = vpop.f32.mrb[2].mxu1 }
  0xde   :  { %v127_v31 = vsub.f32 0.0, %v109_v23  ;;  %v131_v32 = vsub.f32 0.0, %v119_v24  ;;  %v113_v33 = vadd.f32 %v112_v29, %v45_v19  ;;  %v123_v34 = vadd.f32 %v122_v30, %v55_v20  ;;  %v114_v35 = vpop.f32.mrb[3].mxu0  ;;  %v124_v36 = vpop.f32.mrb[3].mxu1 }
  0xdf   :  { %v128_v37 = vsub.f32 0.0, %v111_v27  ;;  %v132_v38 = vsub.f32 0.0, %v121_v28  ;;  %v115_v39 = vadd.f32 %v114_v35, %v45_v19  ;;  %v125_v40 = vadd.f32 %v124_v36, %v55_v20  ;;  %v189_v22 = vpop.permute.xlu1 %188 }
  0xe0   :  { %v135_v41 = vmul.f32 1.442695, %v127_v31  ;;  %v143_v42 = vmul.f32 1.442695, %v131_v32  ;;  %v129_v43 = vsub.f32 0.0, %v113_v33  ;;  %v133_v44 = vsub.f32 0.0, %v123_v34 }
  0xe1   :  { %v137_v45 = vmul.f32 1.442695, %v128_v37  ;;  %v145_v46 = vmul.f32 1.442695, %v132_v38  ;;  %v130_v47 = vsub.f32 0.0, %v115_v39  ;;  %v134_v48 = vsub.f32 0.0, %v125_v40 }
  0xe2   :  { %281 = vpow2.f32 %v135_v41  ;;  %v139_v49 = vmul.f32 1.442695, %v129_v43  ;;  %v147_v50 = vmul.f32 1.442695, %v133_v44  ;;  %v218_v40 = vstv %s439_s4  ;;  %s347_s4 = smov [#allocation3]  }
  0xe3   :  { %283 = vpow2.f32 %v143_v42  ;;  %v141_v51 = vmul.f32 1.442695, %v130_v47  ;;  %v149_v52 = vmul.f32 1.442695, %v134_v48  ;;  %s260_s19 = sshll.u32 %s347_s4, 4  ;;  %s261_s19 = int_to_ptr.vmem [resolvable:$true] %s260_s19 }
  0xe4   :  { %285 = vpow2.f32 %v137_v45  ;;  %s321_s20 = scalar_lea.vmem %s261_s19, 32  ;;  %p326_p1 = scmp.lt.s32.totalorder %s261_s19, %s261_s19 }
  0xe5   :  { %287 = vpow2.f32 %v145_v46  ;;  %p322_p0 = scmp.ne.s32.totalorder %s261_s19, %s321_s20  ;;  %p327_p2 = scmp.lt.s32.totalorder %s321_s20, %s321_s20 }
  0xe6   :  { %289 = vpow2.f32 %v139_v49 }
  0xe7   :  { %291 = vpow2.f32 %v147_v50  ;;  %p328_p3 = por %p327_p2, %p326_p1 }
  0xe8   :  { %293 = vpow2.f32 %v141_v51 }
  0xe9   :  { %295 = vpow2.f32 %v149_v52  ;;  %p329_p4 = pnand %p328_p3, %p322_p0 }
  0xec   :  { %v282_v53 = vpop.eup %281 }
  0xed   :  { %v284_v54 = vpop.eup %283  ;;  %v151_v55 = vadd.f32 1.0, %v282_v53 }
  0xee   :  { %v286_v56 = vpop.eup %285  ;;  %v155_v57 = vadd.f32 1.0, %v284_v54  ;;  %v346_v54 = vmov 1966171168  }
  0xef   :  { %v288_v58 = vpop.eup %287  ;;  %297 = vrcp.f32 %v151_v55  ;;  %v152_v59 = vadd.f32 1.0, %v286_v56  ;;  %v235_v55 = vunpack.c.l.s4 %v346_v54  ;;  %v237_v56 = vlaneseq }
  0xf0   :  { %v290_v60 = vpop.eup %289  ;;  %299 = vrcp.f32 %v155_v57  ;;  %v156_v61 = vadd.f32 1.0, %v288_v58 }
  0xf1   :  { %v292_v62 = vpop.eup %291  ;;  %301 = vrcp.f32 %v152_v59  ;;  %v153_v63 = vadd.f32 1.0, %v290_v60  ;;  %v236_v57 = vunpack.c.0.s8 %v235_v55  ;;  %v238_v58 = vshrl.u32 %v237_v56, 7 }
  0xf2   :  { %v294_v0 = vpop.eup %293  ;;  %303 = vrcp.f32 %v156_v61  ;;  %v157_v1 = vadd.f32 1.0, %v292_v62  ;;  %vm251_vm1 = vcmp.lt.s32.totalorder %v237_v56, 256 }
  0xf3   :  { %v296_v2 = vpop.eup %295  ;;  %305 = vrcp.f32 %v153_v63  ;;  %v154_v3 = vadd.f32 1.0, %v294_v0  ;;  %v239_v60 = vsub.s32 %v236_v57, %v238_v58 }
  0xf4   :  { %307 = vrcp.f32 %v157_v1  ;;  %v158_v4 = vadd.f32 1.0, %v296_v2 }
  0xf5   :  { %309 = vrcp.f32 %v154_v3 }
  0xf6   :  { %311 = vrcp.f32 %v158_v4 }
  0xf9   :  { %v298_v5 = vpop.eup %297 }
  0xfa   :  { %v300_v7 = vpop.eup %299  ;;  %v191_v13 = vmul.f32 %v298_v5, %v174_v6 }
  0xfb   :  { %v302_v8 = vpop.eup %301  ;;  %v195_v18 = vmul.f32 %v300_v7, %v184_v16 }
  0xfc   :  { %v304_v10 = vpop.eup %303  ;;  %v192_v17 = vmul.f32 %v302_v8, %v174_v6 }
  0xfd   :  { %v306_v11 = vpop.eup %305  ;;  %v196_v23 = vmul.f32 %v304_v10, %v184_v16 }
  0xfe   :  { %v308_v12 = vpop.eup %307  ;;  %v193_v14 = vmul.f32 %v306_v11, %v179_v9 }
  0xff   :  { %v310_v15 = vpop.eup %309  ;;  %v197_v24 = vmul.f32 %v308_v12, %v189_v22 }
 0x100   :  { %v199_v19 = vadd.f32 %v193_v14, %v191_v13  ;;  %v194_v20 = vmul.f32 %v310_v15, %v179_v9  ;;  %v312_v21 = vpop.eup %311 }
 0x101   :  { %v198_v28 = vmul.f32 %v312_v21, %v189_v22 }
 0x102   :  { %v200_v25 = vadd.f32 %v199_v19, %v195_v18  ;;  %v208_v26 = vadd.f32 %v194_v20, %v192_v17 }
 0x104   :  { %v201_v27 = vadd.f32 %v200_v25, %v197_v24  ;;  %v209_v29 = vadd.f32 %v208_v26, %v196_v23 }
 0x106   :  { %v202_v30 = vrot.slane %v201_v27, 4  ;;  %v210_v31 = vadd.f32 %v209_v29, %v198_v28 }
 0x108   :  { %v203_v32 = vadd.f32 %v202_v30, %v201_v27  ;;  %v211_v33 = vrot.slane %v210_v31, 4 }
 0x10a   :  { %v204_v34 = vrot.slane %v203_v32, 2  ;;  %v212_v35 = vadd.f32 %v211_v33, %v210_v31 }
 0x10c   :  { %v205_v36 = vadd.f32 %v204_v34, %v203_v32  ;;  %v213_v37 = vrot.slane %v212_v35, 2 }
 0x10e   :  { %v206_v38 = vrot.slane %v205_v36, 1  ;;  %v214_v39 = vadd.f32 %v213_v37, %v212_v35 }
 0x110   :  { %v207_v41 = vadd.f32 %v206_v38, %v205_v36  ;;  %v215_v42 = vrot.slane %v214_v39, 1 }
 0x112   :  { %v219_v43 = vadd.f32 %v218_v40, %v207_v41  ;;  %v216_v44 = vadd.f32 %v215_v42, %v214_v39 }
 0x114   :  { %v221_v45 = vsub.f32 0.0, %v219_v43  ;;  %v220_v46 = vadd.f32 %v218_v40, %v216_v44 }
 0x116   :  { %v223_v47 = vmul.f32 1.442695, %v221_v45  ;;  %v222_v48 = vsub.f32 0.0, %v220_v46 }
 0x118   :  { %313 = vpow2.f32 %v223_v47  ;;  %v225_v49 = vmul.f32 1.442695, %v222_v48 }
 0x11a   :  { %315 = vpow2.f32 %v225_v49 }
 0x122   :  { %v314_v50 = vpop.eup %313 }
 0x123   :  { %v227_v51 = vadd.f32 1.0, %v314_v50 }
 0x124   :  { %v316_v52 = vpop.eup %315 }
 0x125   :  { %317 = vrcp.f32 %v227_v51  ;;  %v228_v53 = vadd.f32 1.0, %v316_v52 }
 0x127   :  { %319 = vrcp.f32 %v228_v53 }
 0x12f   :  { %v318_v59 = vpop.eup %317 }
 0x131   :  { %v320_v61 = vpop.eup %319 }
 0x132   :  { %v233_v62 = vcombine.low %v318_v59, %v320_v61 }
 0x134   :  { %v240_v63 = vrot.slane %v233_v62, %v239_v60 }
 0x136   :  { %v247_v0 = vrot.slane %v240_v63, %v239_v60 }
 0x138   :  { %253 = vst.msk [vmem:[#allocation3] sm:$0x3] %vm251_vm1, %v247_v0 }
 0x139   :  { %332 = shalt.err (!%p329_p4)
}
 0x13a   :  { %s333_s23 = scalar_lea.hbm %s440_s5, 32 }
 0x13b   :  { %p334_p5 = scmp.ne.s32.totalorder %s440_s5, %s333_s23  ;;  %p337_p6 = scmp.lt.u32.totalorder %s333_s23, %s440_s5 }
 0x13d   :  { %p339_p7 = pnand %p337_p6, %p334_p5 }
 0x13f   :  { %342 = shalt.err (!%p339_p7)
}
 0x140   :  { %263 = dma.vmem_to_hbm [thread:$0]  %s261_s19, 32, %s440_s5, [#allocation4]  }
 0x141   :  { %343 = dma.done.wait [#allocation4], 32  }
 0x142   :  { %344 = vsyncadd [#allocation4], 4294967264 }
 0x143   :  { %267 = vsyncpa [#allocation4], 1 }

</bundles_post_ra>
